<compile_context>
chip_gen: v7x
topology: tpu7x:2x2x1
jax: 0.10.0
libtpu: 0.0.40
codegen_flags: <defaults>
</compile_context>

<pallas_src>
import functools
import math

import jax
import jax.numpy as jnp
from jax.experimental import pallas as pl
from jax.experimental.pallas import tpu as pltpu

_LOG_2PI = math.log(2.0 * math.pi)
_LANE = 128


def _mix_gaussian_loss_kernel(x_ref, y_ref, out_ref, *, log_scale_min,
                              total_t, t_tile, n_inner, mask_needed):
    # x_ref  : (B_TILE, 3, nr_mix, T_TILE) VMEM (tile-aligned parameter groups)
    # y_ref  : (B_TILE, 1, 1, T_TILE)      VMEM
    # out_ref: (1, B_TILE, 1, T_TILE)      VMEM f32, resident across the inner-T axis
    ti = pl.program_id(2)

    @pl.when(ti == 0)
    def _():
        out_ref[...] = jnp.zeros_like(out_ref)

    logits = x_ref[:, 0, :, :].astype(jnp.float32)            # (B_TILE, nr_mix, T_TILE)
    means = x_ref[:, 1, :, :].astype(jnp.float32)
    log_scales = jnp.maximum(                                  # torch.clamp(min=...)
        x_ref[:, 2, :, :].astype(jnp.float32), log_scale_min)
    y = y_ref[:, 0, :, :].astype(jnp.float32)                  # (B_TILE, 1, T_TILE)

    centered = y - means
    inv_var = jnp.exp(-2.0 * log_scales)                       # one EUP exp, no extra VPU mul
    # Normal(loc=0, scale=exp(log_scales)).log_prob(centered)
    log_n = -0.5 * centered * centered * inv_var - log_scales - 0.5 * _LOG_2PI

    def _lse_mix(a):  # stable logsumexp over the (sublane) mixture axis
        m = jnp.max(a, axis=1, keepdims=True)
        return m + jnp.log(jnp.sum(jnp.exp(a - m), axis=1, keepdims=True))

    # -logsumexp(logN + log_softmax(logits)) == lse(logits) - lse(logits + logN)
    loss_row = _lse_mix(logits) - _lse_mix(logits + log_n)     # (B_TILE, 1, T_TILE)

    if not mask_needed:
        # T is a multiple of T_TILE and there are no padded grid steps:
        # no iota/compare/select on the hot path.
        out_ref[...] += loss_row[None].astype(out_ref.dtype)
    else:
        to = pl.program_id(1)
        t_blk = to * n_inner + ti
        first_masked = total_t // t_tile   # first block index containing any invalid lane

        @pl.when(t_blk < first_masked)
        def _():
            out_ref[...] += loss_row[None].astype(out_ref.dtype)

        @pl.when(t_blk >= first_masked)
        def _():
            lane = jax.lax.broadcasted_iota(jnp.int32, (1, 1, t_tile), 2)
            valid = (t_blk * t_tile + lane) < total_t
            # NOTE: must stay a select (jnp.where).  Out-of-range lanes of the
            # partial tile can hold garbage that already went through exp/log
            # (NaN/Inf); a multiply-by-mask would propagate it, the select does not.
            masked = jnp.where(valid, loss_row, 0.0)
            out_ref[...] += masked[None].astype(out_ref.dtype)


def _largest_divisor_leq(n, cap):
    cap = max(1, min(n, cap))
    for d in range(cap, 0, -1):
        if n % d == 0:
            return d
    return 1


def mixture_gaussian_loss(input_bct, target_bt1, log_scale_min=-7.0,
                          max_t_tile=8192, block_budget_bytes=4 * 1024 * 1024):
    """Forward pass of MixtureGaussianLoss.

    input_bct : (B, 3*nr_mix, T)  float (f32 or bf16)
    target_bt1: (B, T, 1)         float
    returns   : scalar float32 (mean of per-(b,t) negative log-likelihoods)
    """
    B, C, T = input_bct.shape
    assert C % 3 == 0 and C > 2, "expects C = 3 * nr_mix mixture parameterization"
    # TODO(synk): the C == 2 single-Gaussian special case of mix_gaussian_loss is not implemented.
    nr_mix = C // 3
    assert target_bt1.shape == (B, T, 1)

    itemsize = jnp.dtype(input_bct.dtype).itemsize

    # ---- T tile: lane-dense and as large as the per-block VMEM budget allows ----
    per_t_bytes = 3 * nr_mix * itemsize
    budget_t = (block_budget_bytes // per_t_bytes // _LANE) * _LANE
    cap_t = (int(max_t_tile) // _LANE) * _LANE
    max_t = max(_LANE, min(budget_t, cap_t))
    t_tile = T if T <= max_t else max_t        # == full T (any size) or a multiple of 128
    n_t = pl.cdiv(T, t_tile)

    # ---- B tile: fold batches into one grid step (cuts steps / fills vregs for small T) ----
    per_batch_bytes = 3 * nr_mix * t_tile * itemsize
    b_tile = _largest_divisor_leq(B, max(1, block_budget_bytes // per_batch_bytes))
    n_b = B // b_tile

    # ---- split T into a parallel outer axis (v7x megacore when B is small) and an
    #      "arbitrary" inner reduction axis with a resident accumulator ----
    if n_b >= 4 or n_t <= 1:
        n_outer, n_inner = 1, n_t
    else:
        n_outer = min(4, n_t)
        n_inner = pl.cdiv(n_t, n_outer)
        n_outer = pl.cdiv(n_t, n_inner)        # trim fully-empty outer groups

    mask_needed = (T % t_tile != 0) or (n_outer * n_inner != n_t)

    # Free row-major reshapes: split the channel axis into tile-aligned parameter
    # groups and put the target's time axis on lanes.
    x = jnp.reshape(input_bct, (B, 3, nr_mix, T))
    y = jnp.reshape(target_bt1, (B, 1, 1, T))

    def _t_blk(to, ti):
        # Clamp so padded grid steps re-read a valid block (they are fully masked).
        return jnp.minimum(to * n_inner + ti, n_t - 1)

    kernel = functools.partial(
        _mix_gaussian_loss_kernel,
        log_scale_min=float(log_scale_min),
        total_t=T, t_tile=t_tile, n_inner=n_inner, mask_needed=mask_needed)

    partial_sums = pl.pallas_call(
        kernel,
        out_shape=jax.ShapeDtypeStruct((n_outer, B, 1, t_tile), jnp.float32),
        grid=(n_b, n_outer, n_inner),
        in_specs=[
            pl.BlockSpec((b_tile, 3, nr_mix, t_tile),
                         lambda b, to, ti: (b, 0, 0, _t_blk(to, ti))),
            pl.BlockSpec((b_tile, 1, 1, t_tile),
                         lambda b, to, ti: (b, 0, 0, _t_blk(to, ti))),
        ],
        out_specs=pl.BlockSpec((1, b_tile, 1, t_tile),
                               lambda b, to, ti: (to, b, 0, 0)),
        compiler_params=pltpu.CompilerParams(
            dimension_semantics=("parallel", "parallel", "arbitrary"),
            vmem_limit_bytes=32 * 1024 * 1024,
        ),
    )(x, y)

    # One tiny cross-lane reduce + normalization outside the hot loop.
    return jnp.sum(partial_sums) / (B * T)


def _reference_loss(input_bct, target_bt1, log_scale_min=-7.0):
    """Pure-JAX reference mirroring PyTorch mix_gaussian_loss(reduce=False).mean()."""
    B, C, T = input_bct.shape
    nr_mix = C // 3
    yhat = jnp.transpose(input_bct, (0, 2, 1)).astype(jnp.float32)
    logit_probs = yhat[:, :, :nr_mix]
    means = yhat[:, :, nr_mix:2 * nr_mix]
    log_scales = jnp.maximum(yhat[:, :, 2 * nr_mix:], log_scale_min)
    y = target_bt1.astype(jnp.float32)
    centered = y - means
    log_probs = (-0.5 * centered ** 2 * jnp.exp(-2.0 * log_scales)
                 - log_scales - 0.5 * _LOG_2PI)
    log_probs = log_probs + jax.nn.log_softmax(logit_probs, axis=-1)
    losses = -jax.scipy.special.logsumexp(log_probs, axis=-1)
    return jnp.mean(losses)


if __name__ == "__main__":
    key = jax.random.PRNGKey(0)
    k1, k2, k3, k4, k5, k6 = jax.random.split(key, 6)

    # --- small primary test: B=2, nr_mix=4 (C=12), T=16 (single step, B folded) ---
    B, nr_mix, T = 2, 4, 16
    x = jax.random.normal(k1, (B, 3 * nr_mix, T), dtype=jnp.float32)
    y = jax.random.uniform(k2, (B, T, 1), dtype=jnp.float32, minval=-1.0, maxval=1.0)
    loss = jax.block_until_ready(mixture_gaussian_loss(x, y))
    ref = jax.block_until_ready(_reference_loss(x, y))
    assert jnp.allclose(loss, ref, rtol=1e-4, atol=1e-5), (loss, ref)

    # --- multi-tile path with a partial tail tile and a parallel outer-T axis ---
    B2, nr_mix2, T2 = 2, 10, 640
    x2 = jax.random.normal(k3, (B2, 3 * nr_mix2, T2), dtype=jnp.float32)
    y2 = jax.random.uniform(k4, (B2, T2, 1), dtype=jnp.float32, minval=-1.0, maxval=1.0)
    loss2 = jax.block_until_ready(mixture_gaussian_loss(x2, y2, max_t_tile=256))
    ref2 = jax.block_until_ready(_reference_loss(x2, y2))
    assert jnp.allclose(loss2, ref2, rtol=1e-4, atol=1e-5), (loss2, ref2)

    # --- B=1, outer*inner grid with padded (clamped, fully masked) steps ---
    B3, nr_mix3, T3 = 1, 4, 1200
    x3 = jax.random.normal(k5, (B3, 3 * nr_mix3, T3), dtype=jnp.float32)
    y3 = jax.random.uniform(k6, (B3, T3, 1), dtype=jnp.float32, minval=-1.0, maxval=1.0)
    loss3 = jax.block_until_ready(mixture_gaussian_loss(x3, y3, max_t_tile=128))
    ref3 = jax.block_until_ready(_reference_loss(x3, y3))
    assert jnp.allclose(loss3, ref3, rtol=1e-4, atol=1e-5), (loss3, ref3)

    print("KERNEL_OK")
</pallas_src>

<mosaic_0001>
module attributes {stable_mosaic.version = 11 : i64} {
  func.func @_mix_gaussian_loss_kernel(%arg0: i32, %arg1: i32, %arg2: i32, %arg3: memref<2x3x4x16xf32, #tpu.memory_space<vmem>>, %arg4: memref<2x1x1x16xf32, #tpu.memory_space<vmem>>, %arg5: memref<1x2x1x16xf32, #tpu.memory_space<vmem>>) attributes {dimension_semantics = [#tpu.dimension_semantics<parallel>, #tpu.dimension_semantics<parallel>, #tpu.dimension_semantics<arbitrary>], iteration_bounds = array<i64: 1, 1, 1>, scalar_prefetch = 0 : i64, scratch_operands = 0 : i64, tpu.core_type = #tpu.core_type<tc>, window_params = [{transform_indices = @transform_0, window_bounds = array<i64: 2, 3, 4, 16>}, {transform_indices = @transform_1, window_bounds = array<i64: 2, 1, 1, 16>}, {transform_indices = @transform_2, window_bounds = array<i64: 1, 2, 1, 16>}]} {
    %c0_i32 = arith.constant 0 : i32
    %0 = arith.cmpi eq, %arg2, %c0_i32 : i32
    %1 = arith.extui %0 : i1 to i32
    %c0_i32_0 = arith.constant 0 : i32
    %2 = arith.cmpi ne, %1, %c0_i32_0 : i32
    scf.if %2 {
      %cst_29 = arith.constant 0.000000e+00 : f32
      %49 = vector.broadcast %cst_29 : f32 to vector<1x2x1x16xf32>
      %c0_30 = arith.constant 0 : index
      %c0_31 = arith.constant 0 : index
      %c0_32 = arith.constant 0 : index
      %c0_33 = arith.constant 0 : index
      %50 = vector.load %arg5[%c0_30, %c0_31, %c0_32, %c0_33] : memref<1x2x1x16xf32, #tpu.memory_space<vmem>>, vector<1x2x1x16xf32>
      tpu.vector_store %arg5[%c0_30, %c0_31, %c0_32, %c0_33], %49 {strides = array<i32>} : memref<1x2x1x16xf32, #tpu.memory_space<vmem>>, vector<1x2x1x16xf32>,
    } else {
    }
    %c0 = arith.constant 0 : index
    %c0_1 = arith.constant 0 : index
    %c0_2 = arith.constant 0 : index
    %c0_3 = arith.constant 0 : index
    %3 = vector.load %arg3[%c0, %c0_1, %c0_2, %c0_3] : memref<2x3x4x16xf32, #tpu.memory_space<vmem>>, vector<2x1x4x16xf32>
    %4 = vector.shape_cast %3 : vector<2x1x4x16xf32> to vector<2x4x16xf32>
    %c0_4 = arith.constant 0 : index
    %c1 = arith.constant 1 : index
    %c0_5 = arith.constant 0 : index
    %c0_6 = arith.constant 0 : index
    %5 = vector.load %arg3[%c0_4, %c1, %c0_5, %c0_6] : memref<2x3x4x16xf32, #tpu.memory_space<vmem>>, vector<2x1x4x16xf32>
    %6 = vector.shape_cast %5 : vector<2x1x4x16xf32> to vector<2x4x16xf32>
    %c0_7 = arith.constant 0 : index
    %c2 = arith.constant 2 : index
    %c0_8 = arith.constant 0 : index
    %c0_9 = arith.constant 0 : index
    %7 = vector.load %arg3[%c0_7, %c2, %c0_8, %c0_9] : memref<2x3x4x16xf32, #tpu.memory_space<vmem>>, vector<2x1x4x16xf32>
    %8 = vector.shape_cast %7 : vector<2x1x4x16xf32> to vector<2x4x16xf32>
    %cst = arith.constant -7.000000e+00 : f32
    %9 = vector.broadcast %cst : f32 to vector<2x4x16xf32>
    %10 = arith.maximumf %8, %9 : vector<2x4x16xf32>
    %c0_10 = arith.constant 0 : index
    %c0_11 = arith.constant 0 : index
    %c0_12 = arith.constant 0 : index
    %c0_13 = arith.constant 0 : index
    %11 = vector.load %arg4[%c0_10, %c0_11, %c0_12, %c0_13] : memref<2x1x1x16xf32, #tpu.memory_space<vmem>>, vector<2x1x1x16xf32>
    %12 = vector.shape_cast %11 : vector<2x1x1x16xf32> to vector<2x1x16xf32>
    %13 = vector.broadcast %12 : vector<2x1x16xf32> to vector<2x4x16xf32>
    %14 = arith.subf %13, %6 : vector<2x4x16xf32>
    %cst_14 = arith.constant -2.000000e+00 : f32
    %15 = vector.broadcast %cst_14 : f32 to vector<2x4x16xf32>
    %16 = arith.mulf %15, %10 : vector<2x4x16xf32>
    %17 = math.exp %16 : vector<2x4x16xf32>
    %cst_15 = arith.constant -5.000000e-01 : f32
    %18 = vector.broadcast %cst_15 : f32 to vector<2x4x16xf32>
    %19 = arith.mulf %18, %14 : vector<2x4x16xf32>
    %20 = arith.mulf %19, %14 : vector<2x4x16xf32>
    %21 = arith.mulf %20, %17 : vector<2x4x16xf32>
    %22 = arith.subf %21, %10 : vector<2x4x16xf32>
    %cst_16 = arith.constant 0.918938517 : f32
    %23 = vector.broadcast %cst_16 : f32 to vector<2x4x16xf32>
    %24 = arith.subf %22, %23 : vector<2x4x16xf32>
    %cst_17 = arith.constant dense<0xFF800000> : vector<2x16xf32>
    %25 = vector.multi_reduction <maximumf>, %4, %cst_17 [1] : vector<2x4x16xf32> to vector<2x16xf32>
    %26 = vector.shape_cast %25 : vector<2x16xf32> to vector<2x1x16xf32>
    %27 = vector.broadcast %26 : vector<2x1x16xf32> to vector<2x4x16xf32>
    %28 = arith.subf %4, %27 : vector<2x4x16xf32>
    %29 = math.exp %28 : vector<2x4x16xf32>
    %cst_18 = arith.constant dense<0.000000e+00> : vector<2x16xf32>
    %30 = vector.multi_reduction <add>, %29, %cst_18 [1] : vector<2x4x16xf32> to vector<2x16xf32>
    %31 = vector.shape_cast %30 : vector<2x16xf32> to vector<2x1x16xf32>
    %32 = math.log %31 : vector<2x1x16xf32>
    %33 = arith.addf %26, %32 : vector<2x1x16xf32>
    %34 = arith.addf %4, %24 : vector<2x4x16xf32>
    %cst_19 = arith.constant dense<0xFF800000> : vector<2x16xf32>
    %35 = vector.multi_reduction <maximumf>, %34, %cst_19 [1] : vector<2x4x16xf32> to vector<2x16xf32>
    %36 = vector.shape_cast %35 : vector<2x16xf32> to vector<2x1x16xf32>
    %37 = vector.broadcast %36 : vector<2x1x16xf32> to vector<2x4x16xf32>
    %38 = arith.subf %34, %37 : vector<2x4x16xf32>
    %39 = math.exp %38 : vector<2x4x16xf32>
    %cst_20 = arith.constant dense<0.000000e+00> : vector<2x16xf32>
    %40 = vector.multi_reduction <add>, %39, %cst_20 [1] : vector<2x4x16xf32> to vector<2x16xf32>
    %41 = vector.shape_cast %40 : vector<2x16xf32> to vector<2x1x16xf32>
    %42 = math.log %41 : vector<2x1x16xf32>
    %43 = arith.addf %36, %42 : vector<2x1x16xf32>
    %44 = arith.subf %33, %43 : vector<2x1x16xf32>
    %c0_21 = arith.constant 0 : index
    %c0_22 = arith.constant 0 : index
    %c0_23 = arith.constant 0 : index
    %c0_24 = arith.constant 0 : index
    %45 = vector.load %arg5[%c0_21, %c0_22, %c0_23, %c0_24] : memref<1x2x1x16xf32, #tpu.memory_space<vmem>>, vector<1x2x1x16xf32>
    %46 = vector.shape_cast %44 : vector<2x1x16xf32> to vector<1x2x1x16xf32>
    %47 = arith.addf %45, %46 : vector<1x2x1x16xf32>
    %c0_25 = arith.constant 0 : index
    %c0_26 = arith.constant 0 : index
    %c0_27 = arith.constant 0 : index
    %c0_28 = arith.constant 0 : index
    %48 = vector.load %arg5[%c0_25, %c0_26, %c0_27, %c0_28] : memref<1x2x1x16xf32, #tpu.memory_space<vmem>>, vector<1x2x1x16xf32>
    tpu.vector_store %arg5[%c0_25, %c0_26, %c0_27, %c0_28], %47 {strides = array<i32>} : memref<1x2x1x16xf32, #tpu.memory_space<vmem>>, vector<1x2x1x16xf32>,
    return
  }
  func.func @transform_0(%arg0: i32, %arg1: i32, %arg2: i32) -> (i32, i32, i32, i32) {
    %c1_i32 = arith.constant 1 : i32
    %0 = arith.muli %arg1, %c1_i32 : i32
    %1 = arith.addi %0, %arg2 : i32
    %c0_i32 = arith.constant 0 : i32
    %2 = arith.minsi %1, %c0_i32 : i32
    %c0_i32_0 = arith.constant 0 : i32
    %c0_i32_1 = arith.constant 0 : i32
    %c0_i32_2 = arith.constant 0 : i32
    return %arg0, %c0_i32_0, %c0_i32_1, %2 : i32, i32, i32, i32
  }
  func.func @transform_1(%arg0: i32, %arg1: i32, %arg2: i32) -> (i32, i32, i32, i32) {
    %c1_i32 = arith.constant 1 : i32
    %0 = arith.muli %arg1, %c1_i32 : i32
    %1 = arith.addi %0, %arg2 : i32
    %c0_i32 = arith.constant 0 : i32
    %2 = arith.minsi %1, %c0_i32 : i32
    %c0_i32_0 = arith.constant 0 : i32
    %c0_i32_1 = arith.constant 0 : i32
    %c0_i32_2 = arith.constant 0 : i32
    return %arg0, %c0_i32_0, %c0_i32_1, %2 : i32, i32, i32, i32
  }
  func.func @transform_2(%arg0: i32, %arg1: i32, %arg2: i32) -> (i32, i32, i32, i32) {
    %c0_i32 = arith.constant 0 : i32
    %c0_i32_0 = arith.constant 0 : i32
    %c0_i32_1 = arith.constant 0 : i32
    return %arg1, %arg0, %c0_i32, %c0_i32_0 : i32, i32, i32, i32
  }
}

</mosaic_0001>

<bundles_post_ra>
// kernel: tpu_custom_call.1
= control target key start
LH: loop header
LB: loop body
LE: loop exit
PB: predicated region body
PF: predicated region fallthrough
CT: control target
= control target key end

     0   :  { %7 = vsyncpa [#allocation3], 0  ;;  %s372_s0 = inlined_call_operand.hbm [shape: f32[2,3,4,16], index: 0, kind: input, shape index: {}]   ;;  %s373_s1 = inlined_call_operand.vmem [shape: f32[2,1,1,16], index: 1, kind: input, shape index: {}]   ;;  %s374_s2 = inlined_call_operand.hbm [shape: f32[1,2,1,16], index: 2, kind: output, shape index: {}]  }
   0x1   :  { %8 = vsyncpa [#allocation4], 0  ;;  %s300_s9 = smov [#allocation2]   ;;  %s252_s13 = scalar_lea.hbm %s372_s0, 384 }
   0x2   :  { %s19_s10 = sshll.u32 %s300_s9, 4  ;;  %p253_p0 = scmp.ne.s32.totalorder %s372_s0, %s252_s13  ;;  %s20_s10 = int_to_ptr.vmem [resolvable:$true] %s19_s10 }
   0x3   :  { %p256_p1 = scmp.lt.u32.totalorder %s252_s13, %s372_s0 }
   0x5   :  { %p258_p2 = pnand %p256_p1, %p253_p0 }
   0x7   :  { %261 = shalt.err (!%p258_p2)
}
   0x8   :  { %s262_s18 = scalar_lea.vmem %s20_s10, 384  ;;  %p267_p4 = scmp.lt.s32.totalorder %s20_s10, %s20_s10 }
   0x9   :  { %p263_p3 = scmp.ne.s32.totalorder %s20_s10, %s262_s18  ;;  %p268_p5 = scmp.lt.s32.totalorder %s262_s18, %s262_s18 }
   0xb   :  { %p269_p6 = por %p268_p5, %p267_p4 }
   0xd   :  { %p270_p7 = pnand %p269_p6, %p263_p3 }
   0xf   :  { %273 = shalt.err (!%p270_p7)
}
  0x10   :  { %s301_s19 = smov 64   ;;  %s302_s20 = smov 4  }
  0x11   :  { %25 = dma.hbm_to_vmem [thread:$0]  %s372_s0, 384, %s20_s10, [#allocation3], %s301_s19, %s301_s19, %s302_s20  }
  0x12   :  { %296 = dma.done.wait [#allocation3], 384  }
  0x13   :  { %297 = vsyncadd [#allocation3], 4294966912  ;;  %vm62_vm0 = vcmask 122880   ;;  %v303_v0 = vmov 0.0   ;;  %vm107_vm1 = vcmask 125952  }
  0x14   :  { %63 = vst.msk [vmem:[#allocation5] sm:$0x1] %vm62_vm0, %v303_v0  ;;  %64 = vst.msk [vmem:[#allocation5 + $0x1] sm:$0x1] %vm62_vm0, %v303_v0  ;;  %v65_v1 = vld [vmem:[#allocation2] sm:$0xf] }
  0x15   :  { %v71_v2 = vld [vmem:[#allocation2 + $0x8] sm:$0xf]  ;;  %v108_v4 = vsel %vm107_vm1, %v65_v1, -inf  ;;  %v68_v5 = vld [vmem:[#allocation2 + $0x4] sm:$0xf] }
  0x16   :  { %v73_v3 = vmax.f32 %v71_v2, -7.0  ;;  %v109_v6 = vrot.slane %v108_v4, 4  ;;  %v66_v7 = vld [vmem:[#allocation2 + $0xc] sm:$0xf]  ;;  %v221_v8 = vld [vmem:[%s373_s1] ss:$0 sm:$0xff] }
  0x17   :  { %v72_v10 = vld [vmem:[#allocation2 + $0x14] sm:$0xf]  ;;  %v115_v11 = vsel %vm107_vm1, %v66_v7, -inf  ;;  %v89_v16 = vsub.f32 %v221_v8, %v68_v5  ;;  %v69_v18 = vld [vmem:[#allocation2 + $0x10] sm:$0xf] }
  0x18   :  { %v91_v9 = vmul.f32 -2.0, %v73_v3  ;;  %v110_v12 = vmax.f32 %v108_v4, %v109_v6  ;;  %v74_v13 = vmax.f32 %v72_v10, -7.0  ;;  %v116_v15 = vrot.slane %v115_v11, 4  ;;  %v222_v19 = vld [vmem:[%s373_s1 + $0x1] ss:$0 sm:$0xff]  ;;  %s304_s1 = smov [#allocation5]  }
  0x19   :  { %v90_v24 = vsub.f32 %v222_v19, %v69_v18  ;;  %v97_v26 = vmul.f32 -0.5, %v89_v16  ;;  %s204_s26 = sshll.u32 %s304_s1, 4  ;;  %s205_s26 = int_to_ptr.vmem [resolvable:$true] %s204_s26 }
  0x1a   :  { %v93_v14 = vmul.f32 1.442695, %v91_v9  ;;  %v111_v17 = vrot.slane %v110_v12, 2  ;;  %v92_v20 = vmul.f32 -2.0, %v74_v13  ;;  %v117_v21 = vmax.f32 %v115_v11, %v116_v15  ;;  %s274_s27 = scalar_lea.vmem %s205_s26, 32  ;;  %p279_p9 = scmp.lt.s32.totalorder %s205_s26, %s205_s26 }
  0x1b   :  { %v98_v30 = vmul.f32 -0.5, %v90_v24  ;;  %v99_v32 = vmul.f32 %v97_v26, %v89_v16  ;;  %p275_p8 = scmp.ne.s32.totalorder %s205_s26, %s274_s27  ;;  %p280_p10 = scmp.lt.s32.totalorder %s274_s27, %s274_s27 }
  0x1c   :  { %232 = vpow2.f32 %v93_v14  ;;  %v112_v22 = vmax.f32 %v110_v12, %v111_v17  ;;  %v95_v23 = vmul.f32 1.442695, %v92_v20  ;;  %v118_v25 = vrot.slane %v117_v21, 2 }
  0x1d   :  { %v100_v37 = vmul.f32 %v98_v30, %v90_v24  ;;  %p281_p11 = por %p280_p10, %p279_p9 }
  0x1e   :  { %v113_v27 = vrot.slane %v112_v22, 1  ;;  %234 = vpow2.f32 %v95_v23  ;;  %v119_v28 = vmax.f32 %v117_v21, %v118_v25 }
  0x1f   :  { %p282_p12 = pnand %p281_p11, %p275_p8 }
  0x20   :  { %v344_v29 = vmax.f32 %v112_v22, %v113_v27  ;;  %v120_v31 = vrot.slane %v119_v28, 1 }
  0x22   :  { %v122_v33 = vsub.f32 %v65_v1, %v344_v29  ;;  %v347_v34 = vmax.f32 %v119_v28, %v120_v31 }
  0x24   :  { %v124_v36 = vmul.f32 1.442695, %v122_v33  ;;  %v123_v38 = vsub.f32 %v66_v7, %v347_v34 }
  0x26   :  { %v233_v35 = vpop.eup %232  ;;  %v126_v42 = vmul.f32 1.442695, %v123_v38  ;;  %236 = vpow2.f32 %v124_v36 }
  0x27   :  { %v101_v39 = vmul.f32 %v233_v35, %v99_v32 }
  0x28   :  { %v235_v40 = vpop.eup %234  ;;  %238 = vpow2.f32 %v126_v42 }
  0x29   :  { %v103_v41 = vsub.f32 %v101_v39, %v73_v3  ;;  %v102_v43 = vmul.f32 %v235_v40, %v100_v37 }
  0x2b   :  { %v223_v44 = vadd.f32 -0.9189385, %v103_v41  ;;  %v104_v45 = vsub.f32 %v102_v43, %v74_v13 }
  0x2d   :  { %v148_v46 = vadd.f32 %v223_v44, %v65_v1  ;;  %v224_v47 = vadd.f32 -0.9189385, %v104_v45 }
  0x2f   :  { %v150_v48 = vsel %vm107_vm1, %v148_v46, -inf  ;;  %v149_v50 = vadd.f32 %v224_v47, %v66_v7 }
  0x30   :  { %v151_v49 = vrot.slane %v150_v48, 4  ;;  %v237_v54 = vpop.eup %236 }
  0x31   :  { %v157_v52 = vsel %vm107_vm1, %v149_v50, -inf  ;;  %v128_v59 = vsel %vm107_vm1, %v237_v54, 0.0 }
  0x32   :  { %v152_v51 = vmax.f32 %v150_v48, %v151_v49  ;;  %v158_v53 = vrot.slane %v157_v52, 4  ;;  %v239_v58 = vpop.eup %238  ;;  %v129_v63 = vrot.slane %v128_v59, 4 }
  0x33   :  { %v135_v1 = vsel %vm107_vm1, %v239_v58, 0.0 }
  0x34   :  { %v153_v55 = vrot.slane %v152_v51, 2  ;;  %v159_v56 = vmax.f32 %v157_v52, %v158_v53  ;;  %v136_v4 = vrot.slane %v135_v1, 4  ;;  %v130_v6 = vadd.f32 %v129_v63, %v128_v59  ;;  %v193_v52 = vld [vmem:[#allocation5 + $0x1] sm:$0x1] }
  0x36   :  { %v154_v57 = vmax.f32 %v152_v51, %v153_v55  ;;  %v160_v60 = vrot.slane %v159_v56, 2  ;;  %v137_v9 = vadd.f32 %v136_v4, %v135_v1  ;;  %v131_v11 = vrot.slane %v130_v6, 2 }
  0x38   :  { %v155_v61 = vrot.slane %v154_v57, 1  ;;  %v161_v62 = vmax.f32 %v159_v56, %v160_v60  ;;  %v138_v12 = vrot.slane %v137_v9, 2  ;;  %v132_v13 = vadd.f32 %v131_v11, %v130_v6 }
  0x3a   :  { %v156_v0 = vmax.f32 %v154_v57, %v155_v61  ;;  %v162_v2 = vrot.slane %v161_v62, 1  ;;  %v139_v14 = vadd.f32 %v138_v12, %v137_v9  ;;  %v133_v16 = vrot.slane %v132_v13, 1 }
  0x3c   :  { %v164_v3 = vsub.f32 %v148_v46, %v156_v0  ;;  %v163_v5 = vmax.f32 %v161_v62, %v162_v2  ;;  %v140_v20 = vrot.slane %v139_v14, 1  ;;  %v134_v21 = vadd.f32 %v133_v16, %v132_v13  ;;  %v192_v46 = vld [vmem:[#allocation5] sm:$0x1] }
  0x3e   :  { %v166_v7 = vmul.f32 1.442695, %v164_v3  ;;  %v165_v8 = vsub.f32 %v149_v50, %v163_v5  ;;  %v141_v26 = vadd.f32 %v140_v20, %v139_v14 }
  0x40   :  { %240 = vpow2.f32 %v166_v7  ;;  %v168_v10 = vmul.f32 1.442695, %v165_v8 }
  0x42   :  { %242 = vpow2.f32 %v168_v10 }
  0x43   :  { %244 = vlog2.f32 %v134_v21 }
  0x44   :  { %246 = vlog2.f32 %v141_v26 }
  0x4a   :  { %v241_v15 = vpop.eup %240 }
  0x4b   :  { %v170_v17 = vsel %vm107_vm1, %v241_v15, 0.0 }
  0x4c   :  { %v171_v18 = vrot.slane %v170_v17, 4  ;;  %v243_v19 = vpop.eup %242 }
  0x4d   :  { %v177_v23 = vsel %vm107_vm1, %v243_v19, 0.0  ;;  %v245_v37 = vpop.eup %244 }
  0x4e   :  { %v172_v22 = vadd.f32 %v171_v18, %v170_v17  ;;  %v178_v24 = vrot.slane %v177_v23, 4  ;;  %v247_v38 = vpop.eup %246  ;;  %v143_v39 = vmul.f32 0.6931472, %v245_v37 }
  0x4f   :  { %v145_v41 = vmul.f32 0.6931472, %v247_v38 }
  0x50   :  { %v173_v25 = vrot.slane %v172_v22, 2  ;;  %v179_v27 = vadd.f32 %v178_v24, %v177_v23  ;;  %v146_v42 = vadd.f32 %v143_v39, %v344_v29 }
  0x51   :  { %v147_v47 = vadd.f32 %v145_v41, %v347_v34 }
  0x52   :  { %v174_v28 = vadd.f32 %v173_v25, %v172_v22  ;;  %v180_v30 = vrot.slane %v179_v27, 2 }
  0x54   :  { %v175_v31 = vrot.slane %v174_v28, 1  ;;  %v181_v32 = vadd.f32 %v180_v30, %v179_v27 }
  0x56   :  { %v176_v33 = vadd.f32 %v175_v31, %v174_v28  ;;  %v182_v35 = vrot.slane %v181_v32, 1 }
  0x58   :  { %248 = vlog2.f32 %v176_v33  ;;  %v183_v36 = vadd.f32 %v182_v35, %v181_v32 }
  0x5a   :  { %250 = vlog2.f32 %v183_v36 }
  0x62   :  { %v249_v40 = vpop.eup %248 }
  0x63   :  { %v185_v43 = vmul.f32 0.6931472, %v249_v40 }
  0x64   :  { %v251_v44 = vpop.eup %250 }
  0x65   :  { %v188_v45 = vadd.f32 %v185_v43, %v156_v0  ;;  %v187_v48 = vmul.f32 0.6931472, %v251_v44 }
  0x67   :  { %v190_v49 = vsub.f32 %v146_v42, %v188_v45  ;;  %v189_v50 = vadd.f32 %v187_v48, %v163_v5 }
  0x69   :  { %v194_v51 = vadd.f32 %v192_v46, %v190_v49  ;;  %v191_v53 = vsub.f32 %v147_v47, %v189_v50 }
  0x6b   :  { %197 = vst.msk [vmem:[#allocation5] sm:$0x1] %vm62_vm0, %v194_v51  ;;  %v195_v54 = vadd.f32 %v193_v52, %v191_v53 }
  0x6d   :  { %198 = vst.msk [vmem:[#allocation5 + $0x1] sm:$0x1] %vm62_vm0, %v195_v54 }
  0x6e   :  { %285 = shalt.err (!%p282_p12)
}
  0x6f   :  { %s286_s30 = scalar_lea.hbm %s374_s2, 32 }
  0x70   :  { %p287_p13 = scmp.ne.s32.totalorder %s374_s2, %s286_s30  ;;  %p290_p0 = scmp.lt.u32.totalorder %s286_s30, %s374_s2 }
  0x72   :  { %p292_p1 = pnand %p290_p0, %p287_p13 }
  0x74   :  { %295 = shalt.err (!%p292_p1)
}
  0x75   :  { %s305_s7 = smov 16   ;;  %s306_s8 = smov 1  }
  0x76   :  { %210 = dma.vmem_to_hbm [thread:$0]  %s205_s26, 32, %s374_s2, [#allocation4], %s305_s7, %s305_s7, %s306_s8  }
  0x77   :  { %298 = dma.done.wait [#allocation4], 32  }
  0x78   :  { %299 = vsyncadd [#allocation4], 4294967264 }
  0x79   :  { %214 = vsyncpa [#allocation3], 1 }
  0x7a   :  { %215 = vsyncpa [#allocation4], 1 }

</bundles_post_ra>
